<compile_context>
chip_gen: v7x
topology: tpu7x:2x2x1
jax: 0.10.0
libtpu: 0.0.40
codegen_flags: <defaults>
</compile_context>

<pallas_src>
import functools

import numpy as np
import jax
import jax.numpy as jnp
from jax.experimental import pallas as pl
from jax.experimental.pallas import tpu as pltpu

N_QUBITS = 4
DIM = 2 ** N_QUBITS

_TB_CAP = 16384          # max lanes per batch tile (bf16 tile = 32*16384*2 B = 1 MiB)
_PALLAS_MIN_BATCH = 1024  # below this, a fused einsum beats custom-call overhead


# ----------------------- circuit construction (glue, numpy) -----------------

def _rx(t):
    c, s = np.cos(t / 2.0), np.sin(t / 2.0)
    return np.array([[c, -1j * s], [-1j * s, c]], dtype=np.complex128)


def _ry(t):
    c, s = np.cos(t / 2.0), np.sin(t / 2.0)
    return np.array([[c, -s], [s, c]], dtype=np.complex128)


def _rz(t):
    return np.array([[np.exp(-1j * t / 2.0), 0.0],
                     [0.0, np.exp(1j * t / 2.0)]], dtype=np.complex128)


def _cnot_matrix(control, target, n):
    # qubit 0 is the most-significant bit
    dim = 2 ** n
    U = np.zeros((dim, dim), dtype=np.complex128)
    for i in range(dim):
        cbit = (i >> (n - 1 - control)) & 1
        j = i ^ ((1 << (n - 1 - target)) if cbit else 0)
        U[j, i] = 1.0
    return U


def _xyz_layer(w, n):
    # per qubit q: apply Rx(w[3q]) then Ry(w[3q+1]) then Rz(w[3q+2])
    U = np.array([[1.0]], dtype=np.complex128)
    for q in range(n):
        uq = _rz(w[3 * q + 2]) @ _ry(w[3 * q + 1]) @ _rx(w[3 * q])
        U = np.kron(U, uq)
    return U


def _ring_of_cnot(n):
    U = np.eye(2 ** n, dtype=np.complex128)
    for c in range(n):
        U = _cnot_matrix(c, (c + 1) % n, n) @ U
    return U


def circuit_unitary(w, n):
    # XYZ, ring, XYZ, ring, XYZ, ring, XYZ   (state evolves psi -> G psi)
    U = np.eye(2 ** n, dtype=np.complex128)
    ring = _ring_of_cnot(n)
    for layer in range(4):
        U = _xyz_layer(w[3 * n * layer: 3 * n * (layer + 1)], n) @ U
        if layer < 3:
            U = ring @ U
    return U


def pack_block_real_permuted(U):
    """Block-real matrix Mt (2N, 2N) such that Mt @ [xr^T; xi^T] = [psi_r^T; psi_i^T],
    with rows permuted so rows [0, N) carry PauliZ(+1) amplitudes (qubit 0 = MSB)
    and rows [N, 2N) carry PauliZ(-1) amplitudes."""
    N = U.shape[0]
    Ur, Ui = U.real, U.imag
    M = np.block([[Ur, -Ui], [Ui, Ur]])            # (2N, 2N)
    h = N // 2
    perm = np.concatenate([np.arange(0, h),          # psi_r rows, z = +1
                           np.arange(N, N + h),      # psi_i rows, z = +1
                           np.arange(h, N),          # psi_r rows, z = -1
                           np.arange(N + h, 2 * N)]) # psi_i rows, z = -1
    return M[perm]


# ----------------------------- Pallas kernel --------------------------------

def qudis_kernel(mt_ref, xt_ref, out_ref, *, n_dim):
    # psi_packed^T = Mt @ [xr^T ; xi^T]  -- single bf16 MXU matmul, f32 accumulate
    psi_t = jnp.dot(mt_ref[...], xt_ref[...],
                    preferred_element_type=jnp.float32)          # (2N, TB) f32
    # Epilogue on VPU/XLU (free filler next to the MXU matmul).
    prob = psi_t * psi_t
    # Rows were permuted on the host: [0, n_dim) -> z=+1, [n_dim, 2N) -> z=-1.
    out_ref[...] = (jnp.sum(prob[:n_dim], axis=0, keepdims=True)
                    - jnp.sum(prob[n_dim:], axis=0, keepdims=True))  # (1, TB)


def _cdiv(a, b):
    return -(-a // b)


def _round_up(a, m):
    return _cdiv(a, m) * m


def _choose_tb(batch):
    """Pick a lane tile width: as large as useful (cap 16384), preferring an
    even number of grid steps so v7x megacore can shard them."""
    lanes = _round_up(max(batch, 1), 128)
    if lanes == 128:
        return 128                                   # single minimal tile
    tb = min(_TB_CAP, lanes)
    steps = _cdiv(lanes, tb)
    if steps == 1:
        tb = _round_up(lanes // 2, 128)              # split into 2 tiles
    elif steps % 2 == 1:
        tb_even = _round_up(_cdiv(lanes, steps + 1), 128)
        if tb_even >= 128 and _cdiv(lanes, tb_even) % 2 == 0:
            tb = tb_even
    return max(tb, 128)


def qudis_forward_pallas(mt, xt):
    """mt: (2N, 2N) block-real permuted unitary; xt: (2N, B) packed [xr^T; xi^T].
    Returns (B, 1) float32 PauliZ_0 expectation values."""
    two_n, batch = xt.shape
    n_dim = two_n // 2

    # bf16 operands for the bf16-native MXU; no-op if the caller already
    # supplies bf16 (recommended, so no extra HBM convert pass over xt).
    mt = mt.astype(jnp.bfloat16)
    xt = xt.astype(jnp.bfloat16)

    tb = _choose_tb(batch)
    steps = _cdiv(batch, tb)
    out_lanes = steps * tb      # lane-dense output slab -> unmasked stores

    out = pl.pallas_call(
        functools.partial(qudis_kernel, n_dim=n_dim),
        out_shape=jax.ShapeDtypeStruct((1, out_lanes), jnp.float32),
        grid=(steps,),
        in_specs=[
            pl.BlockSpec((two_n, two_n), lambda i: (0, 0)),   # unitary, resident
            pl.BlockSpec((two_n, tb), lambda i: (0, i)),      # batch tile (lanes)
        ],
        out_specs=pl.BlockSpec((1, tb), lambda i: (0, i)),
        compiler_params=pltpu.CompilerParams(
            dimension_semantics=("parallel",),
            vmem_limit_bytes=32 * 1024 * 1024),
    )(mt, xt)

    return out[:, :batch].T      # (B, 1); garbage lanes past B are sliced away


def _qudis_forward_einsum(mt, xt):
    # Small-batch path: plain fused XLA ops beat custom-call + grid overhead.
    two_n, _ = xt.shape
    n_dim = two_n // 2
    psi_t = jnp.dot(mt.astype(jnp.float32), xt.astype(jnp.float32))
    prob = psi_t * psi_t
    z = jnp.sum(prob[:n_dim], axis=0) - jnp.sum(prob[n_dim:], axis=0)
    return z[:, None]


qudis_forward_pallas_jit = jax.jit(qudis_forward_pallas)
_qudis_forward_einsum_jit = jax.jit(_qudis_forward_einsum)


def qudis_forward(mt, xt):
    """Dispatcher: Pallas kernel for large batches, fused einsum otherwise."""
    if xt.shape[1] < _PALLAS_MIN_BATCH:
        return _qudis_forward_einsum_jit(mt, xt)
    return qudis_forward_pallas_jit(mt, xt)


# --------------------------------- main --------------------------------------

def _make_state(key, batch):
    kr, ki = jax.random.split(key)
    xr = np.asarray(jax.random.normal(kr, (batch, DIM)), dtype=np.float64)
    xi = np.asarray(jax.random.normal(ki, (batch, DIM)), dtype=np.float64)
    norm = np.sqrt(np.sum(xr ** 2 + xi ** 2, axis=-1, keepdims=True))
    return xr / norm, xi / norm


def _reference(U, xr, xi):
    zdiag = np.kron(np.array([1.0, -1.0]), np.ones(DIM // 2))   # Z on qubit 0 (MSB)
    psi = (U @ (xr + 1j * xi).T).T
    return np.real(np.sum(np.conj(psi) * zdiag * psi, axis=-1, keepdims=True))


if __name__ == "__main__":
    n = N_QUBITS
    B = 2
    key = jax.random.PRNGKey(0)
    kw, kx, kx2 = jax.random.split(key, 3)

    # Parameter init exactly as the module: uniform(0, 2*pi) * init_std,
    # scaled by w_mul in forward (use_wscale=True, lrmul=1, gain=sqrt(2)).
    gain = 2 ** 0.5
    lrmul = 1.0
    he_std = gain * 5 ** (-0.5)
    init_std = 1.0 / lrmul
    w_mul = he_std * lrmul
    weight = np.asarray(
        jax.random.uniform(kw, (12 * n,), minval=0.0, maxval=2.0 * np.pi),
        dtype=np.float64) * init_std
    w = weight * w_mul

    U = circuit_unitary(w, n)                      # (2^n, 2^n) complex

    # Operand prep: block-real packed (and Z-permuted) unitary in bf16.
    mt = jnp.asarray(pack_block_real_permuted(U), dtype=jnp.bfloat16)   # (2N, 2N)

    # --- primary check: module-shaped input x (B, 1, 2^n), B = 2 ---
    xr0, xi0 = _make_state(kx, B)
    xt = jnp.asarray(np.concatenate([xr0.T, xi0.T], axis=0), dtype=jnp.bfloat16)  # (2N, B)

    out = jax.block_until_ready(qudis_forward_pallas_jit(mt, xt))
    ref = _reference(U, xr0, xi0)
    assert out.shape == (B, 1)
    # bf16 operands -> relaxed tolerance (expectation values live in [-1, 1]).
    assert np.allclose(np.asarray(out, dtype=np.float64), ref,
                       atol=3e-2, rtol=3e-2), (out, ref)

    # Small-batch dispatcher path (fused einsum) agrees too.
    out_small = jax.block_until_ready(qudis_forward(mt, xt))
    assert np.allclose(np.asarray(out_small, dtype=np.float64), ref,
                       atol=3e-2, rtol=3e-2), (out_small, ref)

    # --- secondary check: multi-step even grid with a ragged tail (no host pad) ---
    B2 = 384
    xr1, xi1 = _make_state(kx2, B2)
    xt1 = jnp.asarray(np.concatenate([xr1.T, xi1.T], axis=0), dtype=jnp.bfloat16)
    out1 = jax.block_until_ready(qudis_forward_pallas_jit(mt, xt1))
    ref1 = _reference(U, xr1, xi1)
    assert out1.shape == (B2, 1)
    assert np.allclose(np.asarray(out1, dtype=np.float64), ref1,
                       atol=3e-2, rtol=3e-2)

    print("KERNEL_OK")
</pallas_src>

<mosaic_0001>
module attributes {stable_mosaic.version = 11 : i64} {
  func.func @qudis_kernel(%arg0: i32, %arg1: memref<32x32xbf16, #tpu.memory_space<vmem>>, %arg2: memref<32x128xbf16, #tpu.memory_space<vmem>>, %arg3: memref<1x128xf32, #tpu.memory_space<vmem>>) attributes {dimension_semantics = [#tpu.dimension_semantics<parallel>], iteration_bounds = array<i64: 1>, scalar_prefetch = 0 : i64, scratch_operands = 0 : i64, tpu.core_type = #tpu.core_type<tc>, window_params = [{pipeline_mode = #tpu.pipeline_mode<synchronous>, transform_indices = @transform_0, window_bounds = array<i64: 32, 32>}, {transform_indices = @transform_1, window_bounds = array<i64: 32, 128>}, {transform_indices = @transform_2, window_bounds = array<i64: 1, 128>}]} {
    %c0 = arith.constant 0 : index
    %c0_0 = arith.constant 0 : index
    %0 = vector.load %arg1[%c0, %c0_0] : memref<32x32xbf16, #tpu.memory_space<vmem>>, vector<32x32xbf16>
    %c0_1 = arith.constant 0 : index
    %c0_2 = arith.constant 0 : index
    %1 = vector.load %arg2[%c0_1, %c0_2] : memref<32x128xbf16, #tpu.memory_space<vmem>>, vector<32x128xbf16>
    %cst = arith.constant dense<0.000000e+00> : vector<32x128xf32>
    %2 = tpu.matmul %0, %1, %cst {dimension_numbers = #tpu.dot_dimension_numbers<[1], [0], [0], [1], [0, 0, 1, 1], [], []>} : vector<32x32xbf16>, vector<32x128xbf16>, vector<32x128xf32> -> vector<32x128xf32>
    %3 = arith.mulf %2, %2 : vector<32x128xf32>
    %4 = vector.extract_strided_slice %3 {offsets = [0, 0], sizes = [16, 128], strides = [1, 1]} : vector<32x128xf32> to vector<16x128xf32>
    %cst_3 = arith.constant dense<0.000000e+00> : vector<128xf32>
    %5 = vector.multi_reduction <add>, %4, %cst_3 [0] : vector<16x128xf32> to vector<128xf32>
    %6 = vector.shape_cast %5 : vector<128xf32> to vector<1x128xf32>
    %7 = vector.extract_strided_slice %3 {offsets = [16, 0], sizes = [16, 128], strides = [1, 1]} : vector<32x128xf32> to vector<16x128xf32>
    %cst_4 = arith.constant dense<0.000000e+00> : vector<128xf32>
    %8 = vector.multi_reduction <add>, %7, %cst_4 [0] : vector<16x128xf32> to vector<128xf32>
    %9 = vector.shape_cast %8 : vector<128xf32> to vector<1x128xf32>
    %10 = arith.subf %6, %9 : vector<1x128xf32>
    %c0_5 = arith.constant 0 : index
    %c0_6 = arith.constant 0 : index
    %11 = vector.load %arg3[%c0_5, %c0_6] : memref<1x128xf32, #tpu.memory_space<vmem>>, vector<1x128xf32>
    tpu.vector_store %arg3[%c0_5, %c0_6], %10 {strides = array<i32>} : memref<1x128xf32, #tpu.memory_space<vmem>>, vector<1x128xf32>,
    return
  }
  func.func @transform_0(%arg0: i32) -> (i32, i32) {
    %c0_i32 = arith.constant 0 : i32
    %c0_i32_0 = arith.constant 0 : i32
    %c0_i32_1 = arith.constant 0 : i32
    return %c0_i32, %c0_i32_0 : i32, i32
  }
  func.func @transform_1(%arg0: i32) -> (i32, i32) {
    %c0_i32 = arith.constant 0 : i32
    %c0_i32_0 = arith.constant 0 : i32
    return %c0_i32, %arg0 : i32, i32
  }
  func.func @transform_2(%arg0: i32) -> (i32, i32) {
    %c0_i32 = arith.constant 0 : i32
    %c0_i32_0 = arith.constant 0 : i32
    return %c0_i32, %arg0 : i32, i32
  }
}

</mosaic_0001>

<bundles_post_ra>
// kernel: qudis_forward_pallas.1
= control target key start
LH: loop header
LB: loop body
LE: loop exit
PB: predicated region body
PF: predicated region fallthrough
CT: control target
= control target key end

     0   :  { %vm42_vm0 = vcmask 261120   ;;  %s174_s1 = inlined_call_operand.vmem [shape: bf16[32,2], index: 1, kind: input, shape index: {}]   ;;  %s175_s0 = inlined_call_operand.vmem [shape: bf16[32,32], index: 0, kind: input, shape index: {}]   ;;  %s176_s2 = inlined_call_operand.vmem [shape: f32[1,128], index: 2, kind: output, shape index: {}]  }
   0x1   :  { %v140_v0 = vld [vmem:[%s174_s1] sm:$0xff]   ;;  %v141_v1 = vld [vmem:[%s174_s1 + $0x8] sm:$0xff]  }
   0x2   :  { %132 = vmatprep.subr.bf16.mxu0 %v140_v0  ;;  %v142_v2 = vld [vmem:[%s175_s0] sm:$0xff]   ;;  %v143_v3 = vld [vmem:[%s175_s0 + $0x8] sm:$0xff]  }
   0x3   :  { %133 = vmatpush3.bf16.msra.mxu0 %v140_v0  ;;  %136 = vmatprep.mubr.msk.bf16.mxu0 %vm42_vm0, %v142_v2 }
   0x4   :  { %134 = vmatprep.subr.bf16.mxu0 %v141_v1 }
   0x7   :  { %135 = vmatpush3.bf16.msra.mxu0 %v141_v1 }
   0xa   :  { %137 = vmatmul.mubr.msk.bf16.vlgmr.msra.gmra.mrb[0].mxu0 %vm42_vm0, %v143_v3 }
  0xdd   :  { %v138_v4 = vpop.f32.mrb[0].mxu0 }
  0xde   :  { %v83_v5 = vpop.f32.mrb[1].mxu0  ;;  %v100_v7 = vmul.f32 %v138_v4, %v138_v4 }
  0xdf   :  { %v139_v6 = vpop.f32.mrb[2].mxu0  ;;  %v98_v10 = vmul.f32 %v83_v5, %v83_v5 }
  0xe0   :  { %v101_v8 = vmul.f32 %v139_v6, %v139_v6  ;;  %v86_v9 = vpop.f32.mrb[3].mxu0 }
  0xe1   :  { %v99_v11 = vmul.f32 %v86_v9, %v86_v9 }
  0xe2   :  { %v109_v12 = vadd.f32 %v101_v8, %v100_v7 }
  0xe3   :  { %v102_v13 = vadd.f32 %v99_v11, %v98_v10 }
  0xe4   :  { %v110_v14 = vrot.slane %v109_v12, 4 }
  0xe5   :  { %v103_v15 = vrot.slane %v102_v13, 4 }
  0xe6   :  { %v111_v16 = vadd.f32 %v110_v14, %v109_v12 }
  0xe7   :  { %v104_v17 = vadd.f32 %v103_v15, %v102_v13 }
  0xe8   :  { %v112_v18 = vrot.slane %v111_v16, 2 }
  0xe9   :  { %v105_v19 = vrot.slane %v104_v17, 2 }
  0xea   :  { %v113_v20 = vadd.f32 %v112_v18, %v111_v16 }
  0xeb   :  { %v106_v21 = vadd.f32 %v105_v19, %v104_v17 }
  0xec   :  { %v114_v22 = vrot.slane %v113_v20, 1 }
  0xed   :  { %v107_v23 = vrot.slane %v106_v21, 1 }
  0xee   :  { %v115_v24 = vadd.f32 %v114_v22, %v113_v20 }
  0xef   :  { %v108_v25 = vadd.f32 %v107_v23, %v106_v21 }
  0xf1   :  { %v116_v26 = vsub.f32 %v108_v25, %v115_v24 }
  0xf3   :  { %117 = vst [vmem:[%s176_s2] sm:$0x1] %v116_v26 }

</bundles_post_ra>
